<compile_context>
chip_gen: v6e
topology: v6e:2x2x1
jax: 0.10.0
libtpu: 0.0.40
codegen_flags: <defaults>
</compile_context>

<pallas_src>
import jax
import jax.numpy as jnp
import numpy as np
from jax import lax
from jax.experimental import pallas as pl
from jax.experimental.pallas import tpu as pltpu

LANES = 128


def deep_factor_nn(x, X_r, params):
    """x: (T, N, C) f32, X_r: (T, N, 1) f32 -> (T, P) f32."""
    W1, b1, W2, b2, W3, b3, betas = params
    T, N, C = x.shape
    K = W3.shape[1]
    P = betas.shape[0]
    TN = T * N
    KA = K + 1                                   # augmented factor count (ones row)
    P_pad = max(LANES, pl.cdiv(P, LANES) * LANES)

    # ---- wrapper-side layout / parameter plumbing (no activation compute) ----
    x_t = x.reshape(TN, C).T                     # (C, TN): features on sublanes, T*N on lanes
    r_row = X_r.reshape(1, TN)                   # (1, TN): lane-dense returns
    # Zero-pad W3/b3 with one extra output column: tanh(0)=0 -> exp(0)=1 gives
    # the implicit "ones" factor used to fold rbar into the num matmul.
    w3_aug = jnp.zeros((W3.shape[0], KA), jnp.float32).at[:, :K].set(W3)
    b3_aug = jnp.zeros((1, KA), jnp.float32).at[:, :K].set(b3)
    # betas^T, zero-padded on both axes: row K (ones-factor) contributes 0,
    # lanes >= P are sliced off after the call (lane-dense unmasked store).
    betas_t = jnp.zeros((KA, P_pad), jnp.float32).at[:K, :P].set(betas.T)

    def mlp_layer(blk, w_ref, b_ref):
        # blk: (c_in, TN) f32 block; w_ref: SMEM (c_in, c_out); b_ref: SMEM (1, c_out).
        # VPU scalar-broadcast FMAs; bias fused as accumulator init; one tanh
        # pass over the whole (c_out, TN) block (single EUP push).
        c_in, c_out = w_ref.shape
        rows = []
        for j in range(c_out):
            acc = blk[0:1, :] * w_ref[0, j] + b_ref[0, j]
            for c in range(1, c_in):
                acc = acc + blk[c:c + 1, :] * w_ref[c, j]
            rows.append(acc)
        return jnp.tanh(jnp.concatenate(rows, axis=0))          # (c_out, TN)

    def kernel(x_ref, r_ref, w1_ref, b1_ref, w2_ref, b2_ref,
               w3_ref, b3_ref, bt_ref, out_ref):
        # ---- MLP in transposed layout (features on sublanes, T*N on lanes) ----
        h = mlp_layer(x_ref[...], w1_ref, b1_ref)               # (4, TN)
        h = mlp_layer(h, w2_ref, b2_ref)                        # (4, TN)
        h = mlp_layer(h, w3_ref, b3_ref)                        # (KA, TN); row K == 0
        e = jnp.exp(h)                                          # (KA, TN); row K == 1

        # ---- segment one-hot built on the VPU (no HBM input) ----
        col = lax.broadcasted_iota(jnp.int32, (T, TN), 1)       # flattened (t,n) index
        row = lax.broadcasted_iota(jnp.int32, (T, TN), 0)       # time-step index
        start = row * N
        mask = (col >= start) & (col < start + N)               # (T, TN)
        seg = jnp.where(mask, 1.0, 0.0)                         # (T, TN) f32
        seg_r = jnp.where(mask, r_ref[...], 0.0)                # (T, TN): seg * r

        # ---- per-time-step reductions over stocks: MXU, contracting lane axes ----
        dn = (((1,), (1,)), ((), ()))                           # A @ B^T
        s_aug = lax.dot_general(seg, e, dn,
                                preferred_element_type=jnp.float32)    # (T, KA); col K = N
        num_aug = lax.dot_general(seg_r, e, dn,
                                  preferred_element_type=jnp.float32)  # (T, KA); col K = N*rbar

        # Softmax-weighted mean returns (cols < K) and rbar (col K), exact divide.
        g = num_aug / s_aug                                     # (T, KA)
        f = g - g[:, K:K + 1]                                   # subtract rbar; col K -> 0

        # Portfolio return estimates; (T, P_pad) lane-dense unmasked store.
        out_ref[...] = jnp.dot(f, bt_ref[...],
                               preferred_element_type=jnp.float32)

    vmem = pl.BlockSpec(memory_space=pltpu.MemorySpace.VMEM)
    smem = pl.BlockSpec(memory_space=pltpu.MemorySpace.SMEM)

    out = pl.pallas_call(
        kernel,
        out_shape=jax.ShapeDtypeStruct((T, P_pad), jnp.float32),
        in_specs=[vmem, vmem,               # x_t, r_row
                  smem, smem, smem, smem,   # W1, b1, W2, b2
                  smem, smem,               # W3 (padded), b3 (padded)
                  vmem],                    # betas^T (padded)
        out_specs=vmem,
    )(x_t, r_row, W1, b1, W2, b2, w3_aug, b3_aug, betas_t)

    return out[:, :P]


def ref_forward(x, X_r, params):
    """Pure-JAX mirror of the PyTorch forward (for validation)."""
    W1, b1, W2, b2, W3, b3, betas = params
    h = jnp.tanh(x @ W1 + b1[0])
    h = jnp.tanh(h @ W2 + b2[0])
    h = jnp.tanh(h @ W3 + b3[0])
    w = jax.nn.softmax(h, axis=1) - 1.0 / h.shape[1]
    f = jnp.einsum('tnk,tn->tk', w, X_r[..., 0])
    return f @ betas.T


def init_params(key, n_char, n_test_pf, n_deep_factors):
    ks = jax.random.split(key, 7)
    W1 = jax.random.normal(ks[0], (n_char, 4), jnp.float32) * 0.5
    b1 = jax.random.normal(ks[1], (1, 4), jnp.float32) * 0.1
    W2 = jax.random.normal(ks[2], (4, 4), jnp.float32) * 0.5
    b2 = jax.random.normal(ks[3], (1, 4), jnp.float32) * 0.1
    W3 = jax.random.normal(ks[4], (4, n_deep_factors), jnp.float32) * 0.5
    b3 = jax.random.normal(ks[5], (1, n_deep_factors), jnp.float32) * 0.1
    betas = jax.random.uniform(ks[6], (n_test_pf, n_deep_factors), jnp.float32)
    return (W1, b1, W2, b2, W3, b3, betas)


if __name__ == "__main__":
    n_stock_characteristics = 4
    n_test_pf = 6
    n_deep_factors = 2
    T, N = 8, 16   # time steps, stocks -> T*N = 128 (one full lane dimension)

    key = jax.random.PRNGKey(0)
    k_x, k_r, k_p = jax.random.split(key, 3)
    x = jax.random.normal(k_x, (T, N, n_stock_characteristics), jnp.float32)
    X_r = jax.random.normal(k_r, (T, N, 1), jnp.float32) * 0.05
    params = init_params(k_p, n_stock_characteristics, n_test_pf, n_deep_factors)

    out = jax.block_until_ready(deep_factor_nn(x, X_r, params))
    ref = jax.block_until_ready(ref_forward(x, X_r, params))

    # Exact division restored (no approx reciprocal) -> f32-level agreement.
    np.testing.assert_allclose(np.asarray(out), np.asarray(ref),
                               rtol=1e-5, atol=2e-6)
    print("KERNEL_OK")
</pallas_src>

<mosaic_0001>
module attributes {stable_mosaic.version = 11 : i64} {
  func.func @kernel(%arg0: memref<4x128xf32, #tpu.memory_space<vmem>>, %arg1: memref<1x128xf32, #tpu.memory_space<vmem>>, %arg2: memref<4x4xf32, #tpu.memory_space<smem>>, %arg3: memref<1x4xf32, #tpu.memory_space<smem>>, %arg4: memref<4x4xf32, #tpu.memory_space<smem>>, %arg5: memref<1x4xf32, #tpu.memory_space<smem>>, %arg6: memref<4x3xf32, #tpu.memory_space<smem>>, %arg7: memref<1x3xf32, #tpu.memory_space<smem>>, %arg8: memref<3x128xf32, #tpu.memory_space<vmem>>, %arg9: memref<8x128xf32, #tpu.memory_space<vmem>>) attributes {dimension_semantics = [], scalar_prefetch = 0 : i64, scratch_operands = 0 : i64, tpu.core_type = #tpu.core_type<tc>} {
    %c0 = arith.constant 0 : index
    %c0_0 = arith.constant 0 : index
    %0 = vector.load %arg0[%c0, %c0_0] : memref<4x128xf32, #tpu.memory_space<vmem>>, vector<4x128xf32>
    %1 = vector.extract_strided_slice %0 {offsets = [0, 0], sizes = [1, 128], strides = [1, 1]} : vector<4x128xf32> to vector<1x128xf32>
    %c0_1 = arith.constant 0 : index
    %c0_2 = arith.constant 0 : index
    %2 = memref.load %arg2[%c0_1, %c0_2] : memref<4x4xf32, #tpu.memory_space<smem>>
    %3 = vector.broadcast %2 : f32 to vector<1x128xf32>
    %4 = arith.mulf %1, %3 : vector<1x128xf32>
    %c0_3 = arith.constant 0 : index
    %c0_4 = arith.constant 0 : index
    %5 = memref.load %arg3[%c0_3, %c0_4] : memref<1x4xf32, #tpu.memory_space<smem>>
    %6 = vector.broadcast %5 : f32 to vector<1x128xf32>
    %7 = arith.addf %4, %6 : vector<1x128xf32>
    %8 = vector.extract_strided_slice %0 {offsets = [1, 0], sizes = [1, 128], strides = [1, 1]} : vector<4x128xf32> to vector<1x128xf32>
    %c1 = arith.constant 1 : index
    %c0_5 = arith.constant 0 : index
    %9 = memref.load %arg2[%c1, %c0_5] : memref<4x4xf32, #tpu.memory_space<smem>>
    %10 = vector.broadcast %9 : f32 to vector<1x128xf32>
    %11 = arith.mulf %8, %10 : vector<1x128xf32>
    %12 = arith.addf %7, %11 : vector<1x128xf32>
    %13 = vector.extract_strided_slice %0 {offsets = [2, 0], sizes = [1, 128], strides = [1, 1]} : vector<4x128xf32> to vector<1x128xf32>
    %c2 = arith.constant 2 : index
    %c0_6 = arith.constant 0 : index
    %14 = memref.load %arg2[%c2, %c0_6] : memref<4x4xf32, #tpu.memory_space<smem>>
    %15 = vector.broadcast %14 : f32 to vector<1x128xf32>
    %16 = arith.mulf %13, %15 : vector<1x128xf32>
    %17 = arith.addf %12, %16 : vector<1x128xf32>
    %18 = vector.extract_strided_slice %0 {offsets = [3, 0], sizes = [1, 128], strides = [1, 1]} : vector<4x128xf32> to vector<1x128xf32>
    %c3 = arith.constant 3 : index
    %c0_7 = arith.constant 0 : index
    %19 = memref.load %arg2[%c3, %c0_7] : memref<4x4xf32, #tpu.memory_space<smem>>
    %20 = vector.broadcast %19 : f32 to vector<1x128xf32>
    %21 = arith.mulf %18, %20 : vector<1x128xf32>
    %22 = arith.addf %17, %21 : vector<1x128xf32>
    %23 = vector.extract_strided_slice %0 {offsets = [0, 0], sizes = [1, 128], strides = [1, 1]} : vector<4x128xf32> to vector<1x128xf32>
    %c0_8 = arith.constant 0 : index
    %c1_9 = arith.constant 1 : index
    %24 = memref.load %arg2[%c0_8, %c1_9] : memref<4x4xf32, #tpu.memory_space<smem>>
    %25 = vector.broadcast %24 : f32 to vector<1x128xf32>
    %26 = arith.mulf %23, %25 : vector<1x128xf32>
    %c0_10 = arith.constant 0 : index
    %c1_11 = arith.constant 1 : index
    %27 = memref.load %arg3[%c0_10, %c1_11] : memref<1x4xf32, #tpu.memory_space<smem>>
    %28 = vector.broadcast %27 : f32 to vector<1x128xf32>
    %29 = arith.addf %26, %28 : vector<1x128xf32>
    %30 = vector.extract_strided_slice %0 {offsets = [1, 0], sizes = [1, 128], strides = [1, 1]} : vector<4x128xf32> to vector<1x128xf32>
    %c1_12 = arith.constant 1 : index
    %c1_13 = arith.constant 1 : index
    %31 = memref.load %arg2[%c1_12, %c1_13] : memref<4x4xf32, #tpu.memory_space<smem>>
    %32 = vector.broadcast %31 : f32 to vector<1x128xf32>
    %33 = arith.mulf %30, %32 : vector<1x128xf32>
    %34 = arith.addf %29, %33 : vector<1x128xf32>
    %35 = vector.extract_strided_slice %0 {offsets = [2, 0], sizes = [1, 128], strides = [1, 1]} : vector<4x128xf32> to vector<1x128xf32>
    %c2_14 = arith.constant 2 : index
    %c1_15 = arith.constant 1 : index
    %36 = memref.load %arg2[%c2_14, %c1_15] : memref<4x4xf32, #tpu.memory_space<smem>>
    %37 = vector.broadcast %36 : f32 to vector<1x128xf32>
    %38 = arith.mulf %35, %37 : vector<1x128xf32>
    %39 = arith.addf %34, %38 : vector<1x128xf32>
    %40 = vector.extract_strided_slice %0 {offsets = [3, 0], sizes = [1, 128], strides = [1, 1]} : vector<4x128xf32> to vector<1x128xf32>
    %c3_16 = arith.constant 3 : index
    %c1_17 = arith.constant 1 : index
    %41 = memref.load %arg2[%c3_16, %c1_17] : memref<4x4xf32, #tpu.memory_space<smem>>
    %42 = vector.broadcast %41 : f32 to vector<1x128xf32>
    %43 = arith.mulf %40, %42 : vector<1x128xf32>
    %44 = arith.addf %39, %43 : vector<1x128xf32>
    %45 = vector.extract_strided_slice %0 {offsets = [0, 0], sizes = [1, 128], strides = [1, 1]} : vector<4x128xf32> to vector<1x128xf32>
    %c0_18 = arith.constant 0 : index
    %c2_19 = arith.constant 2 : index
    %46 = memref.load %arg2[%c0_18, %c2_19] : memref<4x4xf32, #tpu.memory_space<smem>>
    %47 = vector.broadcast %46 : f32 to vector<1x128xf32>
    %48 = arith.mulf %45, %47 : vector<1x128xf32>
    %c0_20 = arith.constant 0 : index
    %c2_21 = arith.constant 2 : index
    %49 = memref.load %arg3[%c0_20, %c2_21] : memref<1x4xf32, #tpu.memory_space<smem>>
    %50 = vector.broadcast %49 : f32 to vector<1x128xf32>
    %51 = arith.addf %48, %50 : vector<1x128xf32>
    %52 = vector.extract_strided_slice %0 {offsets = [1, 0], sizes = [1, 128], strides = [1, 1]} : vector<4x128xf32> to vector<1x128xf32>
    %c1_22 = arith.constant 1 : index
    %c2_23 = arith.constant 2 : index
    %53 = memref.load %arg2[%c1_22, %c2_23] : memref<4x4xf32, #tpu.memory_space<smem>>
    %54 = vector.broadcast %53 : f32 to vector<1x128xf32>
    %55 = arith.mulf %52, %54 : vector<1x128xf32>
    %56 = arith.addf %51, %55 : vector<1x128xf32>
    %57 = vector.extract_strided_slice %0 {offsets = [2, 0], sizes = [1, 128], strides = [1, 1]} : vector<4x128xf32> to vector<1x128xf32>
    %c2_24 = arith.constant 2 : index
    %c2_25 = arith.constant 2 : index
    %58 = memref.load %arg2[%c2_24, %c2_25] : memref<4x4xf32, #tpu.memory_space<smem>>
    %59 = vector.broadcast %58 : f32 to vector<1x128xf32>
    %60 = arith.mulf %57, %59 : vector<1x128xf32>
    %61 = arith.addf %56, %60 : vector<1x128xf32>
    %62 = vector.extract_strided_slice %0 {offsets = [3, 0], sizes = [1, 128], strides = [1, 1]} : vector<4x128xf32> to vector<1x128xf32>
    %c3_26 = arith.constant 3 : index
    %c2_27 = arith.constant 2 : index
    %63 = memref.load %arg2[%c3_26, %c2_27] : memref<4x4xf32, #tpu.memory_space<smem>>
    %64 = vector.broadcast %63 : f32 to vector<1x128xf32>
    %65 = arith.mulf %62, %64 : vector<1x128xf32>
    %66 = arith.addf %61, %65 : vector<1x128xf32>
    %67 = vector.extract_strided_slice %0 {offsets = [0, 0], sizes = [1, 128], strides = [1, 1]} : vector<4x128xf32> to vector<1x128xf32>
    %c0_28 = arith.constant 0 : index
    %c3_29 = arith.constant 3 : index
    %68 = memref.load %arg2[%c0_28, %c3_29] : memref<4x4xf32, #tpu.memory_space<smem>>
    %69 = vector.broadcast %68 : f32 to vector<1x128xf32>
    %70 = arith.mulf %67, %69 : vector<1x128xf32>
    %c0_30 = arith.constant 0 : index
    %c3_31 = arith.constant 3 : index
    %71 = memref.load %arg3[%c0_30, %c3_31] : memref<1x4xf32, #tpu.memory_space<smem>>
    %72 = vector.broadcast %71 : f32 to vector<1x128xf32>
    %73 = arith.addf %70, %72 : vector<1x128xf32>
    %74 = vector.extract_strided_slice %0 {offsets = [1, 0], sizes = [1, 128], strides = [1, 1]} : vector<4x128xf32> to vector<1x128xf32>
    %c1_32 = arith.constant 1 : index
    %c3_33 = arith.constant 3 : index
    %75 = memref.load %arg2[%c1_32, %c3_33] : memref<4x4xf32, #tpu.memory_space<smem>>
    %76 = vector.broadcast %75 : f32 to vector<1x128xf32>
    %77 = arith.mulf %74, %76 : vector<1x128xf32>
    %78 = arith.addf %73, %77 : vector<1x128xf32>
    %79 = vector.extract_strided_slice %0 {offsets = [2, 0], sizes = [1, 128], strides = [1, 1]} : vector<4x128xf32> to vector<1x128xf32>
    %c2_34 = arith.constant 2 : index
    %c3_35 = arith.constant 3 : index
    %80 = memref.load %arg2[%c2_34, %c3_35] : memref<4x4xf32, #tpu.memory_space<smem>>
    %81 = vector.broadcast %80 : f32 to vector<1x128xf32>
    %82 = arith.mulf %79, %81 : vector<1x128xf32>
    %83 = arith.addf %78, %82 : vector<1x128xf32>
    %84 = vector.extract_strided_slice %0 {offsets = [3, 0], sizes = [1, 128], strides = [1, 1]} : vector<4x128xf32> to vector<1x128xf32>
    %c3_36 = arith.constant 3 : index
    %c3_37 = arith.constant 3 : index
    %85 = memref.load %arg2[%c3_36, %c3_37] : memref<4x4xf32, #tpu.memory_space<smem>>
    %86 = vector.broadcast %85 : f32 to vector<1x128xf32>
    %87 = arith.mulf %84, %86 : vector<1x128xf32>
    %88 = arith.addf %83, %87 : vector<1x128xf32>
    %89 = tpu.concatenate %22, %44, %66, %88 in 0 : vector<1x128xf32>, vector<1x128xf32>, vector<1x128xf32>, vector<1x128xf32> -> vector<4x128xf32>
    %90 = math.tanh %89 : vector<4x128xf32>
    %91 = vector.extract_strided_slice %90 {offsets = [0, 0], sizes = [1, 128], strides = [1, 1]} : vector<4x128xf32> to vector<1x128xf32>
    %c0_38 = arith.constant 0 : index
    %c0_39 = arith.constant 0 : index
    %92 = memref.load %arg4[%c0_38, %c0_39] : memref<4x4xf32, #tpu.memory_space<smem>>
    %93 = vector.broadcast %92 : f32 to vector<1x128xf32>
    %94 = arith.mulf %91, %93 : vector<1x128xf32>
    %c0_40 = arith.constant 0 : index
    %c0_41 = arith.constant 0 : index
    %95 = memref.load %arg5[%c0_40, %c0_41] : memref<1x4xf32, #tpu.memory_space<smem>>
    %96 = vector.broadcast %95 : f32 to vector<1x128xf32>
    %97 = arith.addf %94, %96 : vector<1x128xf32>
    %98 = vector.extract_strided_slice %90 {offsets = [1, 0], sizes = [1, 128], strides = [1, 1]} : vector<4x128xf32> to vector<1x128xf32>
    %c1_42 = arith.constant 1 : index
    %c0_43 = arith.constant 0 : index
    %99 = memref.load %arg4[%c1_42, %c0_43] : memref<4x4xf32, #tpu.memory_space<smem>>
    %100 = vector.broadcast %99 : f32 to vector<1x128xf32>
    %101 = arith.mulf %98, %100 : vector<1x128xf32>
    %102 = arith.addf %97, %101 : vector<1x128xf32>
    %103 = vector.extract_strided_slice %90 {offsets = [2, 0], sizes = [1, 128], strides = [1, 1]} : vector<4x128xf32> to vector<1x128xf32>
    %c2_44 = arith.constant 2 : index
    %c0_45 = arith.constant 0 : index
    %104 = memref.load %arg4[%c2_44, %c0_45] : memref<4x4xf32, #tpu.memory_space<smem>>
    %105 = vector.broadcast %104 : f32 to vector<1x128xf32>
    %106 = arith.mulf %103, %105 : vector<1x128xf32>
    %107 = arith.addf %102, %106 : vector<1x128xf32>
    %108 = vector.extract_strided_slice %90 {offsets = [3, 0], sizes = [1, 128], strides = [1, 1]} : vector<4x128xf32> to vector<1x128xf32>
    %c3_46 = arith.constant 3 : index
    %c0_47 = arith.constant 0 : index
    %109 = memref.load %arg4[%c3_46, %c0_47] : memref<4x4xf32, #tpu.memory_space<smem>>
    %110 = vector.broadcast %109 : f32 to vector<1x128xf32>
    %111 = arith.mulf %108, %110 : vector<1x128xf32>
    %112 = arith.addf %107, %111 : vector<1x128xf32>
    %113 = vector.extract_strided_slice %90 {offsets = [0, 0], sizes = [1, 128], strides = [1, 1]} : vector<4x128xf32> to vector<1x128xf32>
    %c0_48 = arith.constant 0 : index
    %c1_49 = arith.constant 1 : index
    %114 = memref.load %arg4[%c0_48, %c1_49] : memref<4x4xf32, #tpu.memory_space<smem>>
    %115 = vector.broadcast %114 : f32 to vector<1x128xf32>
    %116 = arith.mulf %113, %115 : vector<1x128xf32>
    %c0_50 = arith.constant 0 : index
    %c1_51 = arith.constant 1 : index
    %117 = memref.load %arg5[%c0_50, %c1_51] : memref<1x4xf32, #tpu.memory_space<smem>>
    %118 = vector.broadcast %117 : f32 to vector<1x128xf32>
    %119 = arith.addf %116, %118 : vector<1x128xf32>
    %120 = vector.extract_strided_slice %90 {offsets = [1, 0], sizes = [1, 128], strides = [1, 1]} : vector<4x128xf32> to vector<1x128xf32>
    %c1_52 = arith.constant 1 : index
    %c1_53 = arith.constant 1 : index
    %121 = memref.load %arg4[%c1_52, %c1_53] : memref<4x4xf32, #tpu.memory_space<smem>>
    %122 = vector.broadcast %121 : f32 to vector<1x128xf32>
    %123 = arith.mulf %120, %122 : vector<1x128xf32>
    %124 = arith.addf %119, %123 : vector<1x128xf32>
    %125 = vector.extract_strided_slice %90 {offsets = [2, 0], sizes = [1, 128], strides = [1, 1]} : vector<4x128xf32> to vector<1x128xf32>
    %c2_54 = arith.constant 2 : index
    %c1_55 = arith.constant 1 : index
    %126 = memref.load %arg4[%c2_54, %c1_55] : memref<4x4xf32, #tpu.memory_space<smem>>
    %127 = vector.broadcast %126 : f32 to vector<1x128xf32>
    %128 = arith.mulf %125, %127 : vector<1x128xf32>
    %129 = arith.addf %124, %128 : vector<1x128xf32>
    %130 = vector.extract_strided_slice %90 {offsets = [3, 0], sizes = [1, 128], strides = [1, 1]} : vector<4x128xf32> to vector<1x128xf32>
    %c3_56 = arith.constant 3 : index
    %c1_57 = arith.constant 1 : index
    %131 = memref.load %arg4[%c3_56, %c1_57] : memref<4x4xf32, #tpu.memory_space<smem>>
    %132 = vector.broadcast %131 : f32 to vector<1x128xf32>
    %133 = arith.mulf %130, %132 : vector<1x128xf32>
    %134 = arith.addf %129, %133 : vector<1x128xf32>
    %135 = vector.extract_strided_slice %90 {offsets = [0, 0], sizes = [1, 128], strides = [1, 1]} : vector<4x128xf32> to vector<1x128xf32>
    %c0_58 = arith.constant 0 : index
    %c2_59 = arith.constant 2 : index
    %136 = memref.load %arg4[%c0_58, %c2_59] : memref<4x4xf32, #tpu.memory_space<smem>>
    %137 = vector.broadcast %136 : f32 to vector<1x128xf32>
    %138 = arith.mulf %135, %137 : vector<1x128xf32>
    %c0_60 = arith.constant 0 : index
    %c2_61 = arith.constant 2 : index
    %139 = memref.load %arg5[%c0_60, %c2_61] : memref<1x4xf32, #tpu.memory_space<smem>>
    %140 = vector.broadcast %139 : f32 to vector<1x128xf32>
    %141 = arith.addf %138, %140 : vector<1x128xf32>
    %142 = vector.extract_strided_slice %90 {offsets = [1, 0], sizes = [1, 128], strides = [1, 1]} : vector<4x128xf32> to vector<1x128xf32>
    %c1_62 = arith.constant 1 : index
    %c2_63 = arith.constant 2 : index
    %143 = memref.load %arg4[%c1_62, %c2_63] : memref<4x4xf32, #tpu.memory_space<smem>>
    %144 = vector.broadcast %143 : f32 to vector<1x128xf32>
    %145 = arith.mulf %142, %144 : vector<1x128xf32>
    %146 = arith.addf %141, %145 : vector<1x128xf32>
    %147 = vector.extract_strided_slice %90 {offsets = [2, 0], sizes = [1, 128], strides = [1, 1]} : vector<4x128xf32> to vector<1x128xf32>
    %c2_64 = arith.constant 2 : index
    %c2_65 = arith.constant 2 : index
    %148 = memref.load %arg4[%c2_64, %c2_65] : memref<4x4xf32, #tpu.memory_space<smem>>
    %149 = vector.broadcast %148 : f32 to vector<1x128xf32>
    %150 = arith.mulf %147, %149 : vector<1x128xf32>
    %151 = arith.addf %146, %150 : vector<1x128xf32>
    %152 = vector.extract_strided_slice %90 {offsets = [3, 0], sizes = [1, 128], strides = [1, 1]} : vector<4x128xf32> to vector<1x128xf32>
    %c3_66 = arith.constant 3 : index
    %c2_67 = arith.constant 2 : index
    %153 = memref.load %arg4[%c3_66, %c2_67] : memref<4x4xf32, #tpu.memory_space<smem>>
    %154 = vector.broadcast %153 : f32 to vector<1x128xf32>
    %155 = arith.mulf %152, %154 : vector<1x128xf32>
    %156 = arith.addf %151, %155 : vector<1x128xf32>
    %157 = vector.extract_strided_slice %90 {offsets = [0, 0], sizes = [1, 128], strides = [1, 1]} : vector<4x128xf32> to vector<1x128xf32>
    %c0_68 = arith.constant 0 : index
    %c3_69 = arith.constant 3 : index
    %158 = memref.load %arg4[%c0_68, %c3_69] : memref<4x4xf32, #tpu.memory_space<smem>>
    %159 = vector.broadcast %158 : f32 to vector<1x128xf32>
    %160 = arith.mulf %157, %159 : vector<1x128xf32>
    %c0_70 = arith.constant 0 : index
    %c3_71 = arith.constant 3 : index
    %161 = memref.load %arg5[%c0_70, %c3_71] : memref<1x4xf32, #tpu.memory_space<smem>>
    %162 = vector.broadcast %161 : f32 to vector<1x128xf32>
    %163 = arith.addf %160, %162 : vector<1x128xf32>
    %164 = vector.extract_strided_slice %90 {offsets = [1, 0], sizes = [1, 128], strides = [1, 1]} : vector<4x128xf32> to vector<1x128xf32>
    %c1_72 = arith.constant 1 : index
    %c3_73 = arith.constant 3 : index
    %165 = memref.load %arg4[%c1_72, %c3_73] : memref<4x4xf32, #tpu.memory_space<smem>>
    %166 = vector.broadcast %165 : f32 to vector<1x128xf32>
    %167 = arith.mulf %164, %166 : vector<1x128xf32>
    %168 = arith.addf %163, %167 : vector<1x128xf32>
    %169 = vector.extract_strided_slice %90 {offsets = [2, 0], sizes = [1, 128], strides = [1, 1]} : vector<4x128xf32> to vector<1x128xf32>
    %c2_74 = arith.constant 2 : index
    %c3_75 = arith.constant 3 : index
    %170 = memref.load %arg4[%c2_74, %c3_75] : memref<4x4xf32, #tpu.memory_space<smem>>
    %171 = vector.broadcast %170 : f32 to vector<1x128xf32>
    %172 = arith.mulf %169, %171 : vector<1x128xf32>
    %173 = arith.addf %168, %172 : vector<1x128xf32>
    %174 = vector.extract_strided_slice %90 {offsets = [3, 0], sizes = [1, 128], strides = [1, 1]} : vector<4x128xf32> to vector<1x128xf32>
    %c3_76 = arith.constant 3 : index
    %c3_77 = arith.constant 3 : index
    %175 = memref.load %arg4[%c3_76, %c3_77] : memref<4x4xf32, #tpu.memory_space<smem>>
    %176 = vector.broadcast %175 : f32 to vector<1x128xf32>
    %177 = arith.mulf %174, %176 : vector<1x128xf32>
    %178 = arith.addf %173, %177 : vector<1x128xf32>
    %179 = tpu.concatenate %112, %134, %156, %178 in 0 : vector<1x128xf32>, vector<1x128xf32>, vector<1x128xf32>, vector<1x128xf32> -> vector<4x128xf32>
    %180 = math.tanh %179 : vector<4x128xf32>
    %181 = vector.extract_strided_slice %180 {offsets = [0, 0], sizes = [1, 128], strides = [1, 1]} : vector<4x128xf32> to vector<1x128xf32>
    %c0_78 = arith.constant 0 : index
    %c0_79 = arith.constant 0 : index
    %182 = memref.load %arg6[%c0_78, %c0_79] : memref<4x3xf32, #tpu.memory_space<smem>>
    %183 = vector.broadcast %182 : f32 to vector<1x128xf32>
    %184 = arith.mulf %181, %183 : vector<1x128xf32>
    %c0_80 = arith.constant 0 : index
    %c0_81 = arith.constant 0 : index
    %185 = memref.load %arg7[%c0_80, %c0_81] : memref<1x3xf32, #tpu.memory_space<smem>>
    %186 = vector.broadcast %185 : f32 to vector<1x128xf32>
    %187 = arith.addf %184, %186 : vector<1x128xf32>
    %188 = vector.extract_strided_slice %180 {offsets = [1, 0], sizes = [1, 128], strides = [1, 1]} : vector<4x128xf32> to vector<1x128xf32>
    %c1_82 = arith.constant 1 : index
    %c0_83 = arith.constant 0 : index
    %189 = memref.load %arg6[%c1_82, %c0_83] : memref<4x3xf32, #tpu.memory_space<smem>>
    %190 = vector.broadcast %189 : f32 to vector<1x128xf32>
    %191 = arith.mulf %188, %190 : vector<1x128xf32>
    %192 = arith.addf %187, %191 : vector<1x128xf32>
    %193 = vector.extract_strided_slice %180 {offsets = [2, 0], sizes = [1, 128], strides = [1, 1]} : vector<4x128xf32> to vector<1x128xf32>
    %c2_84 = arith.constant 2 : index
    %c0_85 = arith.constant 0 : index
    %194 = memref.load %arg6[%c2_84, %c0_85] : memref<4x3xf32, #tpu.memory_space<smem>>
    %195 = vector.broadcast %194 : f32 to vector<1x128xf32>
    %196 = arith.mulf %193, %195 : vector<1x128xf32>
    %197 = arith.addf %192, %196 : vector<1x128xf32>
    %198 = vector.extract_strided_slice %180 {offsets = [3, 0], sizes = [1, 128], strides = [1, 1]} : vector<4x128xf32> to vector<1x128xf32>
    %c3_86 = arith.constant 3 : index
    %c0_87 = arith.constant 0 : index
    %199 = memref.load %arg6[%c3_86, %c0_87] : memref<4x3xf32, #tpu.memory_space<smem>>
    %200 = vector.broadcast %199 : f32 to vector<1x128xf32>
    %201 = arith.mulf %198, %200 : vector<1x128xf32>
    %202 = arith.addf %197, %201 : vector<1x128xf32>
    %203 = vector.extract_strided_slice %180 {offsets = [0, 0], sizes = [1, 128], strides = [1, 1]} : vector<4x128xf32> to vector<1x128xf32>
    %c0_88 = arith.constant 0 : index
    %c1_89 = arith.constant 1 : index
    %204 = memref.load %arg6[%c0_88, %c1_89] : memref<4x3xf32, #tpu.memory_space<smem>>
    %205 = vector.broadcast %204 : f32 to vector<1x128xf32>
    %206 = arith.mulf %203, %205 : vector<1x128xf32>
    %c0_90 = arith.constant 0 : index
    %c1_91 = arith.constant 1 : index
    %207 = memref.load %arg7[%c0_90, %c1_91] : memref<1x3xf32, #tpu.memory_space<smem>>
    %208 = vector.broadcast %207 : f32 to vector<1x128xf32>
    %209 = arith.addf %206, %208 : vector<1x128xf32>
    %210 = vector.extract_strided_slice %180 {offsets = [1, 0], sizes = [1, 128], strides = [1, 1]} : vector<4x128xf32> to vector<1x128xf32>
    %c1_92 = arith.constant 1 : index
    %c1_93 = arith.constant 1 : index
    %211 = memref.load %arg6[%c1_92, %c1_93] : memref<4x3xf32, #tpu.memory_space<smem>>
    %212 = vector.broadcast %211 : f32 to vector<1x128xf32>
    %213 = arith.mulf %210, %212 : vector<1x128xf32>
    %214 = arith.addf %209, %213 : vector<1x128xf32>
    %215 = vector.extract_strided_slice %180 {offsets = [2, 0], sizes = [1, 128], strides = [1, 1]} : vector<4x128xf32> to vector<1x128xf32>
    %c2_94 = arith.constant 2 : index
    %c1_95 = arith.constant 1 : index
    %216 = memref.load %arg6[%c2_94, %c1_95] : memref<4x3xf32, #tpu.memory_space<smem>>
    %217 = vector.broadcast %216 : f32 to vector<1x128xf32>
    %218 = arith.mulf %215, %217 : vector<1x128xf32>
    %219 = arith.addf %214, %218 : vector<1x128xf32>
    %220 = vector.extract_strided_slice %180 {offsets = [3, 0], sizes = [1, 128], strides = [1, 1]} : vector<4x128xf32> to vector<1x128xf32>
    %c3_96 = arith.constant 3 : index
    %c1_97 = arith.constant 1 : index
    %221 = memref.load %arg6[%c3_96, %c1_97] : memref<4x3xf32, #tpu.memory_space<smem>>
    %222 = vector.broadcast %221 : f32 to vector<1x128xf32>
    %223 = arith.mulf %220, %222 : vector<1x128xf32>
    %224 = arith.addf %219, %223 : vector<1x128xf32>
    %225 = vector.extract_strided_slice %180 {offsets = [0, 0], sizes = [1, 128], strides = [1, 1]} : vector<4x128xf32> to vector<1x128xf32>
    %c0_98 = arith.constant 0 : index
    %c2_99 = arith.constant 2 : index
    %226 = memref.load %arg6[%c0_98, %c2_99] : memref<4x3xf32, #tpu.memory_space<smem>>
    %227 = vector.broadcast %226 : f32 to vector<1x128xf32>
    %228 = arith.mulf %225, %227 : vector<1x128xf32>
    %c0_100 = arith.constant 0 : index
    %c2_101 = arith.constant 2 : index
    %229 = memref.load %arg7[%c0_100, %c2_101] : memref<1x3xf32, #tpu.memory_space<smem>>
    %230 = vector.broadcast %229 : f32 to vector<1x128xf32>
    %231 = arith.addf %228, %230 : vector<1x128xf32>
    %232 = vector.extract_strided_slice %180 {offsets = [1, 0], sizes = [1, 128], strides = [1, 1]} : vector<4x128xf32> to vector<1x128xf32>
    %c1_102 = arith.constant 1 : index
    %c2_103 = arith.constant 2 : index
    %233 = memref.load %arg6[%c1_102, %c2_103] : memref<4x3xf32, #tpu.memory_space<smem>>
    %234 = vector.broadcast %233 : f32 to vector<1x128xf32>
    %235 = arith.mulf %232, %234 : vector<1x128xf32>
    %236 = arith.addf %231, %235 : vector<1x128xf32>
    %237 = vector.extract_strided_slice %180 {offsets = [2, 0], sizes = [1, 128], strides = [1, 1]} : vector<4x128xf32> to vector<1x128xf32>
    %c2_104 = arith.constant 2 : index
    %c2_105 = arith.constant 2 : index
    %238 = memref.load %arg6[%c2_104, %c2_105] : memref<4x3xf32, #tpu.memory_space<smem>>
    %239 = vector.broadcast %238 : f32 to vector<1x128xf32>
    %240 = arith.mulf %237, %239 : vector<1x128xf32>
    %241 = arith.addf %236, %240 : vector<1x128xf32>
    %242 = vector.extract_strided_slice %180 {offsets = [3, 0], sizes = [1, 128], strides = [1, 1]} : vector<4x128xf32> to vector<1x128xf32>
    %c3_106 = arith.constant 3 : index
    %c2_107 = arith.constant 2 : index
    %243 = memref.load %arg6[%c3_106, %c2_107] : memref<4x3xf32, #tpu.memory_space<smem>>
    %244 = vector.broadcast %243 : f32 to vector<1x128xf32>
    %245 = arith.mulf %242, %244 : vector<1x128xf32>
    %246 = arith.addf %241, %245 : vector<1x128xf32>
    %247 = tpu.concatenate %202, %224, %246 in 0 : vector<1x128xf32>, vector<1x128xf32>, vector<1x128xf32> -> vector<3x128xf32>
    %248 = math.tanh %247 : vector<3x128xf32>
    %249 = math.exp %248 : vector<3x128xf32>
    %250 = tpu.iota {dimensions = array<i32: 1>} : vector<8x128xi32>
    %251 = tpu.iota {dimensions = array<i32: 0>} : vector<8x128xi32>
    %c16_i32 = arith.constant 16 : i32
    %252 = vector.broadcast %c16_i32 : i32 to vector<8x128xi32>
    %253 = arith.muli %251, %252 : vector<8x128xi32>
    %254 = arith.cmpi sge, %250, %253 : vector<8x128xi32>
    %c16_i32_108 = arith.constant 16 : i32
    %255 = vector.broadcast %c16_i32_108 : i32 to vector<8x128xi32>
    %256 = arith.addi %253, %255 : vector<8x128xi32>
    %257 = arith.cmpi slt, %250, %256 : vector<8x128xi32>
    %258 = arith.andi %254, %257 : vector<8x128xi1>
    %cst = arith.constant 1.000000e+00 : f32
    %cst_109 = arith.constant 0.000000e+00 : f32
    %259 = vector.broadcast %cst : f32 to vector<8x128xf32>
    %260 = vector.broadcast %cst_109 : f32 to vector<8x128xf32>
    %261 = arith.select %258, %259, %260 : vector<8x128xi1>, vector<8x128xf32>
    %c0_110 = arith.constant 0 : index
    %c0_111 = arith.constant 0 : index
    %262 = vector.load %arg1[%c0_110, %c0_111] : memref<1x128xf32, #tpu.memory_space<vmem>>, vector<1x128xf32>
    %cst_112 = arith.constant 0.000000e+00 : f32
    %263 = vector.shape_cast %262 : vector<1x128xf32> to vector<1x128xf32>
    %264 = vector.broadcast %263 : vector<1x128xf32> to vector<8x128xf32>
    %265 = vector.broadcast %cst_112 : f32 to vector<8x128xf32>
    %266 = arith.select %258, %264, %265 : vector<8x128xi1>, vector<8x128xf32>
    %cst_113 = arith.constant dense<0.000000e+00> : vector<8x3xf32>
    %267 = tpu.matmul %261, %249, %cst_113 {dimension_numbers = #tpu.dot_dimension_numbers<[1], [1], [0], [0], [0, 0, 1, 0], [], []>} : vector<8x128xf32>, vector<3x128xf32>, vector<8x3xf32> -> vector<8x3xf32>
    %cst_114 = arith.constant dense<0.000000e+00> : vector<8x3xf32>
    %268 = tpu.matmul %266, %249, %cst_114 {dimension_numbers = #tpu.dot_dimension_numbers<[1], [1], [0], [0], [0, 0, 1, 0], [], []>} : vector<8x128xf32>, vector<3x128xf32>, vector<8x3xf32> -> vector<8x3xf32>
    %269 = arith.divf %268, %267 : vector<8x3xf32>
    %270 = vector.extract_strided_slice %269 {offsets = [0, 2], sizes = [8, 1], strides = [1, 1]} : vector<8x3xf32> to vector<8x1xf32>
    %271 = vector.broadcast %270 : vector<8x1xf32> to vector<8x3xf32>
    %272 = arith.subf %269, %271 : vector<8x3xf32>
    %c0_115 = arith.constant 0 : index
    %c0_116 = arith.constant 0 : index
    %273 = vector.load %arg8[%c0_115, %c0_116] : memref<3x128xf32, #tpu.memory_space<vmem>>, vector<3x128xf32>
    %cst_117 = arith.constant dense<0.000000e+00> : vector<8x128xf32>
    %274 = tpu.matmul %272, %273, %cst_117 {dimension_numbers = #tpu.dot_dimension_numbers<[1], [0], [0], [1], [0, 0, 1, 1], [], []>} : vector<8x3xf32>, vector<3x128xf32>, vector<8x128xf32> -> vector<8x128xf32>
    %c0_118 = arith.constant 0 : index
    %c0_119 = arith.constant 0 : index
    %275 = vector.load %arg9[%c0_118, %c0_119] : memref<8x128xf32, #tpu.memory_space<vmem>>, vector<8x128xf32>
    tpu.vector_store %arg9[%c0_118, %c0_119], %274 {strides = array<i32>} : memref<8x128xf32, #tpu.memory_space<vmem>>, vector<8x128xf32>,
    return
  }
}

</mosaic_0001>

<bundles_post_ra>
// kernel: tpu_custom_call.1
= control target key start
LH: loop header
LB: loop body
LE: loop exit
PB: predicated region body
PF: predicated region fallthrough
CT: control target
= control target key end

     0   :  { %14 = vsyncpa [#allocation3], 0  ;;  %s1183_s0 = inlined_call_operand.hbm [shape: f32[4,128], index: 0, kind: input, shape index: {}]   ;;  %s1184_s1 = inlined_call_operand.hbm [shape: f32[1,128], index: 1, kind: input, shape index: {}]   ;;  %s1185_s2 = inlined_call_operand.hbm [shape: f32[4,4], index: 2, kind: input, shape index: {}]   ;;  %s1186_s3 = inlined_call_operand.hbm [shape: f32[1,4], index: 3, kind: input, shape index: {}]   ;;  %s1187_s4 = inlined_call_operand.vmem [shape: f32[4,4], index: 4, kind: input, shape index: {}]   ;;  %s1188_s5 = inlined_call_operand.hbm [shape: f32[1,4], index: 5, kind: input, shape index: {}]   ;;  %s1189_s6 = inlined_call_operand.vmem [shape: f32[4,3], index: 6, kind: input, shape index: {}]   ;;  %s1190_s7 = inlined_call_operand.hbm [shape: f32[1,3], index: 7, kind: input, shape index: {}]   ;;  %s1191_s8 = inlined_call_operand.vmem [shape: f32[3,128], index: 8, kind: input, shape index: {}]   ;;  %s1192_s9 = inlined_call_operand.hbm [shape: f32[8,128], index: 9, kind: output, shape index: {}]  }
   0x1   :  { %15 = vsyncpa [#allocation8], 0 }
   0x2   :  { %16 = vsyncpa [#allocation5], 0 }
   0x3   :  { %17 = vsyncpa [#allocation11], 0 }
   0x4   :  { %18 = vsyncpa [#allocation6], 0 }
   0x5   :  { %19 = vsyncpa [#allocation15], 0 }
   0x6   :  { %20 = vsyncpa [#allocation17], 0 }
   0x7   :  { %21 = vsyncpa [#allocation4], 0  ;;  %s958_s30 = smov [#allocation10]   ;;  %s959_s12 = smov [#allocation2]  }
   0x8   :  { %57 = dma.hbm_to_smem %s1186_s3, 16, %s958_s30, [#allocation11]  }
   0x9   :  { %s28_s13 = sshll.u32 %s959_s12, 4  ;;  %s960_s14 = smov [#allocation7]   ;;  %s29_s13 = int_to_ptr.vmem [resolvable:$true] %s28_s13 }
   0xa   :  { %s38_s15 = sshll.u32 %s960_s14, 4  ;;  %s840_s16 = scalar_lea.vmem %s29_s13, 64  ;;  %s39_s15 = int_to_ptr.vmem [resolvable:$true] %s38_s15 }
   0xb   :  { %p841_p0 = scmp.ne.s32.totalorder %s29_s13, %s840_s16  ;;  %p845_p1 = scmp.lt.s32.totalorder %s29_s13, %s29_s13 }
   0xc   :  { %p846_p2 = scmp.lt.s32.totalorder %s840_s16, %s840_s16 }
   0xe   :  { %p847_p3 = por %p846_p2, %p845_p1 }
  0x10   :  { %p848_p4 = pnand %p847_p3, %p841_p0 }
  0x12   :  { %851 = shalt.err (!%p848_p4)
}
  0x13   :  { %31 = dma.hbm_to_vmem [thread:$0]  %s1183_s0, 64, %s29_s13, [#allocation3]  }
  0x14   :  { %s860_s19 = scalar_lea.vmem %s39_s15, 16  ;;  %s864_s3 = scalar_lea.vmem %s39_s15, 32 }
  0x15   :  { %p861_p5 = scmp.ne.s32.totalorder %s39_s15, %s860_s19  ;;  %p865_p6 = scmp.lt.s32.totalorder %s39_s15, %s39_s15 }
  0x16   :  { %p866_p7 = scmp.lt.s32.totalorder %s864_s3, %s860_s19 }
  0x18   :  { %p867_p8 = por %p866_p7, %p865_p6 }
  0x1a   :  { %p868_p9 = pnand %p867_p8, %p861_p5 }
  0x1c   :  { %871 = shalt.err (!%p868_p9)
}
  0x1d   :  { %41 = dma.hbm_to_vmem [thread:$0]  %s1184_s1, 16, %s39_s15, [#allocation8]  }
  0x1e   :  { %s961_s22 = smov [#allocation9]   ;;  %s64_s26 = sshll.u32 %s1187_s4, 4  ;;  %s65_s26 = int_to_ptr.vmem [resolvable:$true] %s64_s26 }
  0x1f   :  { %49 = dma.hbm_to_smem %s1185_s2, 64, %s961_s22, [#allocation5]  }
  0x20   :  { %s880_s27 = scalar_lea.vmem %s65_s26, 64  ;;  %p885_p11 = scmp.lt.s32.totalorder %s65_s26, %s65_s26 }
  0x21   :  { %p881_p10 = scmp.ne.s32.totalorder %s65_s26, %s880_s27  ;;  %p886_p12 = scmp.lt.s32.totalorder %s880_s27, %s880_s27 }
  0x23   :  { %p887_p13 = por %p886_p12, %p885_p11 }
  0x25   :  { %p888_p0 = pnand %p887_p13, %p881_p10 }
  0x27   :  { %891 = shalt.err (!%p888_p0)
}
  0x28   :  { %s962_s28 = smov [#allocation12]   ;;  %s963_s1 = smov [#allocation13]  }
  0x29   :  { %67 = dma.vmem_to_smem %s65_s26, 64, %s962_s28, [#allocation6]  }
  0x2a   :  { %75 = dma.hbm_to_smem %s1188_s5, 16, %s963_s1, [#allocation11]  }
  0x2b   :  { %s82_s11 = sshll.u32 %s1189_s6, 4  ;;  %s83_s11 = int_to_ptr.vmem [resolvable:$true] %s82_s11 }
  0x2c   :  { %s900_s4 = scalar_lea.vmem %s83_s11, 64  ;;  %p905_p2 = scmp.lt.s32.totalorder %s83_s11, %s83_s11 }
  0x2d   :  { %p901_p1 = scmp.ne.s32.totalorder %s83_s11, %s900_s4  ;;  %p906_p3 = scmp.lt.s32.totalorder %s900_s4, %s900_s4 }
  0x2f   :  { %p907_p4 = por %p906_p3, %p905_p2 }
  0x31   :  { %p908_p5 = pnand %p907_p4, %p901_p1 }
  0x33   :  { %911 = shalt.err (!%p908_p5)
}
  0x34   :  { %s964_s12 = smov [#allocation14]   ;;  %s965_s13 = smov [#allocation16]  }
  0x35   :  { %85 = dma.vmem_to_smem %s83_s11, 64, %s964_s12, [#allocation15]  }
  0x36   :  { %93 = dma.hbm_to_smem %s1190_s7, 16, %s965_s13, [#allocation17]  }
  0x37   :  { %940 = dma.done.wait [#allocation3], 64  }
  0x38   :  { %941 = vsyncadd [#allocation3], 4294967232 }
  0x39   :  { %942 = dma.done.wait [#allocation8], 16  }
  0x3a   :  { %943 = vsyncadd [#allocation8], 4294967280 }
  0x3b   :  { %944 = dma.done.wait [#allocation5], 64  }
  0x3c   :  { %945 = vsyncadd [#allocation5], 4294967232 }
  0x3d   :  { %946 = dma.done.wait [#allocation11], 16  }
  0x3e   :  { %947 = vsyncadd [#allocation11], 4294967280 }
  0x3f   :  { %948 = dma.done.wait [#allocation6], 64  }
  0x40   :  { %949 = vsyncadd [#allocation6], 4294967232 }
  0x41   :  { %950 = dma.done.wait [#allocation11], 16  }
  0x42   :  { %951 = vsyncadd [#allocation11], 4294967280 }
  0x43   :  { %952 = dma.done.wait [#allocation15], 64  }
  0x44   :  { %953 = vsyncadd [#allocation15], 4294967232 }
  0x45   :  { %954 = dma.done.wait [#allocation17], 16  }
  0x46   :  { %955 = vsyncadd [#allocation17], 4294967280 }
  0x47   :  { %120 = sfence }
  0x48   :  { %s122_s5 = sld [smem:[#allocation9]]  ;;  %v966_v0 = vmov 0.0   ;;  %vm967_vm0 = vmmov 0   ;;  %v1053_v2 = vld [vmem:[#allocation2] sm:$0xf]  ;;  %vm239_vm1 = vcmask 1040384  }
  0x49   :  { %785 = vmatprep.subr.mxu0 %v966_v0  ;;  %s125_s6 = sld [smem:[#allocation10]]  ;;  %790 = vmatprep.subr.mxu1 %v966_v0  ;;  %vm241_vm2 = vcmask 1041408   ;;  %vm243_vm3 = vcmask 1042432   ;;  %vm626_vm7 = vcmask 23552  }
  0x4a   :  { %s725_s7 = sld [smem:[#allocation9 + $0x80]]  ;;  %787 = vmatprep.mubr.msk.f32.mxu0 %vm967_vm0, %v966_v0  ;;  %792 = vmatprep.mubr.msk.f32.mxu1 %vm967_vm0, %v966_v0 }
  0x4b   :  { %s726_s16 = sld [smem:[#allocation9 + $0x100]] }
  0x4c   :  { %s1047_s17 = sld [smem:[#allocation9 + $0x180]] }
  0x4d   :  { %s728_s18 = sld [smem:[#allocation9 + $0x1]] }
  0x4e   :  { %v123_v1 = vstv %s122_s5  ;;  %s729_s19 = sld [smem:[#allocation10 + $0x1]] }
  0x4f   :  { %s730_s3 = sld [smem:[#allocation9 + $0x81]]  ;;  %v124_v4 = vmul.f32 %v123_v1, %v1053_v2  ;;  %v126_v7 = vstv %s125_s6 }
  0x50   :  { %v129_v3 = vstv %s725_s7  ;;  %s731_s20 = sld [smem:[#allocation9 + $0x101]] }
  0x51   :  { %v130_v5 = vmul.f32 %v129_v3, %v1053_v2  ;;  %v136_v6 = vstv %s726_s16  ;;  %s732_s21 = sld [smem:[#allocation9 + $0x181]]  ;;  %v127_v13 = vadd.f32 %v126_v7, %v124_v4 }
  0x52   :  { %s733_s22 = sld [smem:[#allocation9 + $0x2]]  ;;  %v137_v9 = vmul.f32 %v136_v6, %v1053_v2  ;;  %v143_v10 = vstv %s1047_s17 }
  0x53   :  { %v150_v8 = vstv %s728_s18  ;;  %s1057_s23 = sld [smem:[#allocation10 + $0x2]]  ;;  %v132_v14 = vrot.slane %v130_v5, 1  ;;  %v144_v19 = vmul.f32 %v143_v10, %v1053_v2 }
  0x54   :  { %v151_v11 = vmul.f32 %v150_v8, %v1053_v2  ;;  %v153_v12 = vstv %s729_s19  ;;  %s735_s24 = sld [smem:[#allocation9 + $0x82]]  ;;  %v139_v22 = vrot.slane %v137_v9, 2 }
  0x55   :  { %v156_v15 = vstv %s730_s3  ;;  %s736_s25 = sld [smem:[#allocation9 + $0x102]]  ;;  %v134_v26 = vadd.f32 %v132_v14, %v127_v13  ;;  %v146_v36 = vrot.slane %v144_v19, 3 }
  0x56   :  { %v154_v16 = vadd.f32 %v153_v12, %v151_v11  ;;  %v157_v17 = vmul.f32 %v156_v15, %v1053_v2  ;;  %v163_v18 = vstv %s731_s20  ;;  %s737_s0 = sld [smem:[#allocation9 + $0x182]] }
  0x57   :  { %v164_v20 = vmul.f32 %v163_v18, %v1053_v2  ;;  %v170_v21 = vstv %s732_s21  ;;  %s738_s26 = sld [smem:[#allocation9 + $0x3]]  ;;  %v141_v40 = vadd.f32 %v139_v22, %v134_v26 }
  0x58   :  { %v159_v23 = vrot.slane %v157_v17, 1  ;;  %v171_v24 = vmul.f32 %v170_v21, %v1053_v2  ;;  %v177_v25 = vstv %s733_s22  ;;  %s739_s27 = sld [smem:[#allocation10 + $0x3]] }
  0x59   :  { %v166_v27 = vrot.slane %v164_v20, 2  ;;  %v178_v28 = vmul.f32 %v177_v25, %v1053_v2  ;;  %v180_v29 = vstv %s1057_s23  ;;  %s740_s28 = sld [smem:[#allocation9 + $0x83]]  ;;  %v148_v57 = vadd.f32 %v146_v36, %v141_v40 }
  0x5a   :  { %v161_v30 = vadd.f32 %v159_v23, %v154_v16  ;;  %v173_v31 = vrot.slane %v171_v24, 3  ;;  %v183_v32 = vstv %s735_s24  ;;  %s741_s1 = sld [smem:[#allocation9 + $0x103]] }
  0x5b   :  { %v181_v33 = vadd.f32 %v180_v29, %v178_v28  ;;  %v184_v34 = vmul.f32 %v183_v32, %v1053_v2  ;;  %v190_v35 = vstv %s736_s25  ;;  %s742_s29 = sld [smem:[#allocation9 + $0x183]] }
  0x5c   :  { %v168_v37 = vadd.f32 %v166_v27, %v161_v30  ;;  %v191_v38 = vmul.f32 %v190_v35, %v1053_v2  ;;  %v197_v39 = vstv %s737_s0  ;;  %s1072_s30 = sld [smem:[#allocation12]] }
  0x5d   :  { %v186_v41 = vrot.slane %v184_v34, 1  ;;  %v198_v42 = vmul.f32 %v197_v39, %v1053_v2  ;;  %v204_v43 = vstv %s738_s26  ;;  %s1075_s2 = sld [smem:[#allocation13]] }
  0x5e   :  { %v175_v44 = vadd.f32 %v173_v31, %v168_v37  ;;  %v193_v45 = vrot.slane %v191_v38, 2  ;;  %v205_v46 = vmul.f32 %v204_v43, %v1053_v2  ;;  %v207_v47 = vstv %s739_s27  ;;  %s1078_s10 = sld [smem:[#allocation12 + $0x80]] }
  0x5f   :  { %v188_v48 = vadd.f32 %v186_v41, %v181_v33  ;;  %v200_v49 = vrot.slane %v198_v42, 3  ;;  %v210_v50 = vstv %s740_s28  ;;  %s1081_s11 = sld [smem:[#allocation12 + $0x100]] }
  0x60   :  { %v208_v51 = vadd.f32 %v207_v47, %v205_v46  ;;  %v211_v52 = vmul.f32 %v210_v50, %v1053_v2  ;;  %v217_v53 = vstv %s741_s1  ;;  %v231_v60 = vrot.slane %v175_v44, 7  ;;  %s1083_s4 = sld [smem:[#allocation12 + $0x180]] }
  0x61   :  { %v195_v54 = vadd.f32 %v193_v45, %v188_v48  ;;  %v218_v55 = vmul.f32 %v217_v53, %v1053_v2  ;;  %v224_v56 = vstv %s742_s29  ;;  %s1085_s12 = sld [smem:[#allocation12 + $0x1]] }
  0x62   :  { %v213_v58 = vrot.slane %v211_v52, 1  ;;  %v225_v59 = vmul.f32 %v224_v56, %v1053_v2  ;;  %s1087_s13 = sld [smem:[#allocation13 + $0x1]]  ;;  %v240_v5 = vsel %vm239_vm1, %v148_v57, %v231_v60  ;;  %v247_v9 = vstv %s1072_s30 }
  0x63   :  { %v202_v61 = vadd.f32 %v200_v49, %v195_v54  ;;  %v220_v62 = vrot.slane %v218_v55, 2  ;;  %s1090_s14 = sld [smem:[#allocation12 + $0x81]]  ;;  %v250_v10 = vstv %s1075_s2 }
  0x64   :  { %v215_v63 = vadd.f32 %v213_v58, %v208_v51  ;;  %v227_v1 = vrot.slane %v225_v59, 3  ;;  %s1092_s15 = sld [smem:[#allocation12 + $0x101]]  ;;  %v253_v11 = vstv %s1078_s10 }
  0x65   :  { %v234_v3 = vrot.slane %v202_v61, 6  ;;  %s1094_s5 = sld [smem:[#allocation12 + $0x181]]  ;;  %v260_v12 = vstv %s1081_s11 }
  0x66   :  { %v222_v4 = vadd.f32 %v220_v62, %v215_v63  ;;  %s1097_s6 = sld [smem:[#allocation12 + $0x2]]  ;;  %v267_v13 = vstv %s1083_s4 }
  0x67   :  { %v242_v6 = vsel %vm241_vm2, %v240_v5, %v234_v3  ;;  %s1099_s7 = sld [smem:[#allocation13 + $0x2]]  ;;  %v274_v14 = vstv %s1085_s12 }
  0x68   :  { %v229_v2 = vadd.f32 %v227_v1, %v222_v4  ;;  %s1101_s16 = sld [smem:[#allocation12 + $0x82]]  ;;  %v277_v15 = vstv %s1087_s13 }
  0x69   :  { %s1104_s17 = sld [smem:[#allocation12 + $0x102]]  ;;  %v280_v16 = vstv %s1090_s14 }
  0x6a   :  { %v237_v7 = vrot.slane %v229_v2, 5  ;;  %s1106_s18 = sld [smem:[#allocation12 + $0x182]]  ;;  %v287_v17 = vstv %s1092_s15  ;;  %s970_s15 = smov [#allocation18]  }
  0x6b   :  { %s1108_s19 = sld [smem:[#allocation12 + $0x3]]  ;;  %v294_v18 = vstv %s1094_s5  ;;  %s710_s5 = sshll.u32 %s970_s15, 4  ;;  %s711_s5 = int_to_ptr.vmem [resolvable:$true] %s710_s5 }
  0x6c   :  { %v244_v8 = vsel %vm243_vm3, %v242_v6, %v237_v7  ;;  %s1110_s3 = sld [smem:[#allocation13 + $0x3]]  ;;  %v301_v19 = vstv %s1097_s6  ;;  %p925_p7 = scmp.lt.s32.totalorder %s711_s5, %s711_s5 }
  0x6d   :  { %814 = vtanh.f32 %v244_v8  ;;  %s1112_s20 = sld [smem:[#allocation12 + $0x83]]  ;;  %v304_v20 = vstv %s1099_s7 }
  0x6e   :  { %s1114_s21 = sld [smem:[#allocation12 + $0x103]]  ;;  %v307_v21 = vstv %s1101_s16 }
  0x6f   :  { %s1116_s22 = sld [smem:[#allocation12 + $0x183]]  ;;  %v314_v22 = vstv %s1104_s17 }
  0x70   :  { %v321_v23 = vstv %s1106_s18  ;;  %s1138_s23 = sld [smem:[#allocation14]] }
  0x71   :  { %v328_v24 = vstv %s1108_s19  ;;  %s1141_s24 = sld [smem:[#allocation16]] }
  0x72   :  { %v331_v26 = vstv %s1110_s3  ;;  %s1143_s25 = sld [smem:[#allocation14 + $0x80]] }
  0x73   :  { %v334_v27 = vstv %s1112_s20  ;;  %s1145_s0 = sld [smem:[#allocation14 + $0x100]] }
  0x74   :  { %v341_v28 = vstv %s1114_s21  ;;  %s763_s26 = sld [smem:[#allocation14 + $0x180]] }
  0x75   :  { %v348_v29 = vstv %s1116_s22  ;;  %s764_s27 = sld [smem:[#allocation14 + $0x1]] }
  0x76   :  { %s1149_s28 = sld [smem:[#allocation16 + $0x1]] }
  0x77   :  { %s766_s1 = sld [smem:[#allocation14 + $0x81]] }
  0x78   :  { %s767_s29 = sld [smem:[#allocation14 + $0x101]] }
  0x79   :  { %s768_s30 = sld [smem:[#allocation14 + $0x181]] }
  0x7a   :  { %v815_v25 = vpop.eup %814  ;;  %s1151_s2 = sld [smem:[#allocation14 + $0x2]] }
  0x7b   :  { %v248_v30 = vmul.f32 %v815_v25, %v247_v9  ;;  %v254_v31 = vmul.f32 %v815_v25, %v253_v11  ;;  %v261_v32 = vmul.f32 %v815_v25, %v260_v12  ;;  %v268_v33 = vmul.f32 %v815_v25, %v267_v13  ;;  %s1153_s10 = sld [smem:[#allocation14 + $0x82]] }
  0x7c   :  { %v275_v34 = vmul.f32 %v815_v25, %v274_v14  ;;  %v281_v35 = vmul.f32 %v815_v25, %v280_v16  ;;  %v288_v36 = vmul.f32 %v815_v25, %v287_v17  ;;  %v295_v37 = vmul.f32 %v815_v25, %v294_v18  ;;  %s1155_s11 = sld [smem:[#allocation14 + $0x102]] }
  0x7d   :  { %v251_v38 = vadd.f32 %v250_v10, %v248_v30  ;;  %v256_v39 = vrot.slane %v254_v31, 1  ;;  %v263_v40 = vrot.slane %v261_v32, 2  ;;  %v270_v41 = vrot.slane %v268_v33, 3  ;;  %s1157_s4 = sld [smem:[#allocation14 + $0x182]] }
  0x7e   :  { %v278_v42 = vadd.f32 %v277_v15, %v275_v34  ;;  %v283_v43 = vrot.slane %v281_v35, 1  ;;  %v290_v44 = vrot.slane %v288_v36, 2  ;;  %v297_v45 = vrot.slane %v295_v37, 3  ;;  %s1159_s12 = sld [smem:[#allocation16 + $0x2]] }
  0x7f   :  { %v258_v46 = vadd.f32 %v256_v39, %v251_v38  ;;  %v302_v47 = vmul.f32 %v815_v25, %v301_v19  ;;  %v308_v48 = vmul.f32 %v815_v25, %v307_v21  ;;  %v315_v49 = vmul.f32 %v815_v25, %v314_v22 }
  0x80   :  { %v285_v50 = vadd.f32 %v283_v43, %v278_v42  ;;  %v322_v51 = vmul.f32 %v815_v25, %v321_v23  ;;  %v329_v52 = vmul.f32 %v815_v25, %v328_v24  ;;  %v335_v53 = vmul.f32 %v815_v25, %v334_v27 }
  0x81   :  { %v265_v54 = vadd.f32 %v263_v40, %v258_v46  ;;  %v305_v55 = vadd.f32 %v304_v20, %v302_v47  ;;  %v310_v56 = vrot.slane %v308_v48, 1  ;;  %v317_v57 = vrot.slane %v315_v49, 2 }
  0x82   :  { %v292_v58 = vadd.f32 %v290_v44, %v285_v50  ;;  %v332_v59 = vadd.f32 %v331_v26, %v329_v52  ;;  %v337_v60 = vrot.slane %v335_v53, 1  ;;  %v324_v62 = vrot.slane %v322_v51, 3 }
  0x83   :  { %v312_v61 = vadd.f32 %v310_v56, %v305_v55  ;;  %v342_v63 = vmul.f32 %v815_v25, %v341_v28  ;;  %v349_v1 = vmul.f32 %v815_v25, %v348_v29  ;;  %v272_v3 = vadd.f32 %v270_v41, %v265_v54 }
  0x84   :  { %v299_v4 = vadd.f32 %v297_v45, %v292_v58  ;;  %v339_v5 = vadd.f32 %v337_v60, %v332_v59  ;;  %v368_v17 = vstv %s1138_s23  ;;  %v371_v18 = vstv %s1141_s24 }
  0x85   :  { %v319_v2 = vadd.f32 %v317_v57, %v312_v61  ;;  %v344_v6 = vrot.slane %v342_v63, 2  ;;  %v351_v7 = vrot.slane %v349_v1, 3  ;;  %v374_v19 = vstv %s1143_s25 }
  0x86   :  { %v355_v8 = vrot.slane %v299_v4, 7  ;;  %v381_v20 = vstv %s1145_s0  ;;  %v388_v21 = vstv %s763_s26  ;;  %v395_v22 = vstv %s764_s27 }
  0x87   :  { %v326_v9 = vadd.f32 %v324_v62, %v319_v2  ;;  %v346_v10 = vadd.f32 %v344_v6, %v339_v5  ;;  %v401_v23 = vstv %s766_s1  ;;  %v408_v24 = vstv %s767_s29 }
  0x88   :  { %v363_v11 = vsel %vm239_vm1, %v272_v3, %v355_v8  ;;  %v415_v25 = vstv %s768_s30  ;;  %v398_v27 = vstv %s1149_s28  ;;  %v422_v28 = vstv %s1151_s2 }
  0x89   :  { %v353_v12 = vadd.f32 %v351_v7, %v346_v10  ;;  %v358_v13 = vrot.slane %v326_v9, 6  ;;  %v428_v29 = vstv %s1153_s10  ;;  %v435_v30 = vstv %s1155_s11 }
  0x8a   :  { %v442_v42 = vstv %s1157_s4  ;;  %v425_v46 = vstv %s1159_s12  ;;  %v459_v7 = vlaneseq }
  0x8b   :  { %v361_v14 = vrot.slane %v353_v12, 5  ;;  %v364_v15 = vsel %vm241_vm2, %v363_v11, %v358_v13 }
  0x8c   :  { %v462_v10 = vshrl.u32 %v459_v7, 7  ;;  %v460_v12 = vand.u32 127, %v459_v7 }
  0x8d   :  { %v365_v16 = vsel %vm243_vm3, %v364_v15, %v361_v14  ;;  %v774_v15 = vld [vmem:[#allocation7] ss:$0 sm:$0xff] }
  0x8e   :  { %816 = vtanh.f32 %v365_v16  ;;  %v463_v11 = vmul.u32 16, %v462_v10  ;;  %v968_v16 = vmov 1.0  }
  0x90   :  { %v465_v13 = vadd.s32 16, %v463_v11  ;;  %vm464_vm4 = vcmp.ge.s32.totalorder %v460_v12, %v463_v11 }
  0x92   :  { %vm466_vm5 = vcmp.lt.s32.totalorder %v460_v12, %v465_v13 }
  0x93   :  { %vm467_vm6 = vmand %vm464_vm4, %vm466_vm5 }
  0x9b   :  { %v817_v26 = vpop.eup %816 }
  0x9c   :  { %v369_v31 = vmul.f32 %v817_v26, %v368_v17  ;;  %v375_v32 = vmul.f32 %v817_v26, %v374_v19  ;;  %v382_v33 = vmul.f32 %v817_v26, %v381_v20  ;;  %v389_v34 = vmul.f32 %v817_v26, %v388_v21 }
  0x9d   :  { %v396_v35 = vmul.f32 %v817_v26, %v395_v22  ;;  %v402_v36 = vmul.f32 %v817_v26, %v401_v23  ;;  %v409_v37 = vmul.f32 %v817_v26, %v408_v24  ;;  %v416_v38 = vmul.f32 %v817_v26, %v415_v25 }
  0x9e   :  { %v372_v39 = vadd.f32 %v371_v18, %v369_v31  ;;  %v377_v40 = vrot.slane %v375_v32, 1  ;;  %v384_v41 = vrot.slane %v382_v33, 2  ;;  %v423_v48 = vmul.f32 %v817_v26, %v422_v28  ;;  %v625_v18 = vld [vmem:[%s1191_s8] sm:$0x7]  ;;  %s920_s8 = scalar_lea.vmem %s711_s5, 128 }
  0x9f   :  { %v399_v43 = vadd.f32 %v398_v27, %v396_v35  ;;  %v404_v44 = vrot.slane %v402_v36, 1  ;;  %v411_v45 = vrot.slane %v409_v37, 2  ;;  %v429_v49 = vmul.f32 %v817_v26, %v428_v29  ;;  %p921_p6 = scmp.ne.s32.totalorder %s711_s5, %s920_s8  ;;  %p926_p8 = scmp.lt.s32.totalorder %s920_s8, %s920_s8 }
  0xa0   :  { %v379_v47 = vadd.f32 %v377_v40, %v372_v39  ;;  %v436_v50 = vmul.f32 %v817_v26, %v435_v30  ;;  %v391_v51 = vrot.slane %v389_v34, 3  ;;  %v418_v53 = vrot.slane %v416_v38, 3 }
  0xa1   :  { %v406_v52 = vadd.f32 %v404_v44, %v399_v43  ;;  %v443_v54 = vmul.f32 %v817_v26, %v442_v42  ;;  %v426_v56 = vadd.f32 %v425_v46, %v423_v48  ;;  %v431_v57 = vrot.slane %v429_v49, 1  ;;  %p927_p9 = por %p926_p8, %p925_p7 }
  0xa2   :  { %v386_v55 = vadd.f32 %v384_v41, %v379_v47  ;;  %v438_v58 = vrot.slane %v436_v50, 2  ;;  %v969_v17 = vmov 2  }
  0xa3   :  { %v413_v59 = vadd.f32 %v411_v45, %v406_v52  ;;  %v433_v60 = vadd.f32 %v431_v57, %v426_v56  ;;  %v445_v61 = vrot.slane %v443_v54, 3  ;;  %813 = vset.pattern.permute.xlu0 %v969_v17  ;;  %p928_p10 = pnand %p927_p9, %p921_p6 }
  0xa4   :  { %v393_v62 = vadd.f32 %v391_v51, %v386_v55 }
  0xa5   :  { %v420_v63 = vadd.f32 %v418_v53, %v413_v59  ;;  %v440_v1 = vadd.f32 %v438_v58, %v433_v60 }
  0xa7   :  { %v449_v3 = vrot.slane %v420_v63, 7  ;;  %v447_v4 = vadd.f32 %v445_v61, %v440_v1 }
  0xa9   :  { %v454_v5 = vsel %vm239_vm1, %v393_v62, %v449_v3  ;;  %v452_v2 = vrot.slane %v447_v4, 6 }
  0xab   :  { %v455_v6 = vsel %vm241_vm2, %v454_v5, %v452_v2 }
  0xac   :  { %818 = vtanh.f32 %v455_v6 }
  0xb9   :  { %v819_v8 = vpop.eup %818 }
  0xba   :  { %v457_v9 = vmul.f32 1.442695, %v819_v8 }
  0xbc   :  { %820 = vpow2.f32 %v457_v9 }
  0xc9   :  { %v821_v14 = vpop.eup %820 }
  0xca   :  { %786 = vmatpush3.xpose.msra.mxu0 %v821_v14  ;;  %791 = vmatpush3.xpose.msra.mxu1 %v821_v14 }
  0xcb   :  { %795 = vmatprep.subr.mxu0 %v966_v0 }
  0xcd   :  { %788 = vmatmul.mubr.msk.f32.vlgmr.msra.gmra.mxu0 %vm467_vm6, %v968_v16  ;;  %793 = vmatmul.mubr.msk.f32.vlgmr.msra.gmra.mxu1 %vm467_vm6, %v774_v15 }
  0xce   :  { %797 = vmatprep.mubr.msk.f32.mxu0 %vm967_vm0, %v966_v0  ;;  %796 = vmatpush3.msk.msra.mxu0 %vm243_vm3, %v625_v18 }
 0x18d   :  { %v543_v19 = vpop.f32.mrf.mxu0  ;;  %v613_v20 = vpop.f32.mrf.mxu1 }
 0x18e   :  { %822 = vrcp.f32 %v543_v19 }
 0x18f   :  { %v789_v21 = vpop.f32.mrf.mxu0  ;;  %v794_v22 = vpop.f32.mrf.mxu1 }
 0x19b   :  { %v823_v23 = vpop.eup %822 }
 0x19c   :  { %v618_v24 = vmul.f32 %v823_v23, %v613_v20 }
 0x19e   :  { %621 = vperm.xlu0 %813, %v618_v24  }
 0x219   :  { %v622_v25 = vpop.permute.xlu0 %621 }
 0x21a   :  { %v624_v26 = vsub.f32 %v618_v24, %v622_v25 }
 0x21c   :  { %798 = vmatmul.mubr.msk.f32.vlgmr.msra.gmra.mxu0 %vm626_vm7, %v624_v26 }
 0x2dc   :  { %v699_v0 = vpop.f32.mrf.mxu0 }
 0x2dd   :  { %703 = vst [vmem:[#allocation18] sm:$0xff] %v699_v0 }
 0x2de   :  { %v799_v27 = vpop.f32.mrf.mxu0 }
 0x2df   :  { %931 = shalt.err (!%p928_p10)
}
 0x2e0   :  { %713 = dma.vmem_to_hbm [thread:$0]  %s711_s5, 128, %s1192_s9, [#allocation4]  }
 0x2e1   :  { %956 = dma.done.wait [#allocation4], 128  }
 0x2e2   :  { %957 = vsyncadd [#allocation4], 4294967168 }
 0x2e3   :  { %717 = vsyncpa [#allocation3], 1 }
 0x2e4   :  { %718 = vsyncpa [#allocation8], 1 }
 0x2e5   :  { %719 = vsyncpa [#allocation4], 1 }
 0x2e6   :  { %720 = vsyncpa [#allocation5], 1 }
 0x2e7   :  { %721 = vsyncpa [#allocation11], 1 }
 0x2e8   :  { %722 = vsyncpa [#allocation17], 1 }
 0x2e9   :  { %723 = vsyncpa [#allocation6], 1 }
 0x2ea   :  { %724 = vsyncpa [#allocation15], 1 }

</bundles_post_ra>
